<compile_context>
chip_gen: v5e
topology: v5e:2x2
jax: 0.10.0
libtpu: 0.0.40
codegen_flags: <defaults>
</compile_context>

<pallas_src>
import jax
import jax.numpy as jnp
from jax.experimental import pallas as pl
from jax.experimental.pallas import tpu as pltpu


EPS = 1e-5


def _budgets():
    """Per-generation (target_block_bytes, vmem_limit_bytes)."""
    vmem_cap = 64 * 1024 * 1024  # conservative default (v7x per-TC VMEM)
    try:
        info = pltpu.get_tpu_info()
        cap = int(getattr(info, "vmem_capacity_bytes", 0) or 0)
        if cap > 0:
            vmem_cap = cap
    except Exception:
        pass
    # Leave headroom under physical VMEM for compiler-internal allocations.
    #   v7x (64 MiB)  -> limit 48 MiB, target ~4.8 MiB blocks
    #   v5e/v6e (128) -> limit 96 MiB, target 8 MiB blocks
    vmem_limit = min(vmem_cap * 3 // 4, 96 * 1024 * 1024)
    # Footprint ~= double-buffered in+out (native) + ~3 f32 temps ≈ 7-10x block.
    target_block = max(2 * 1024 * 1024, min(8 * 1024 * 1024, vmem_limit // 10))
    return target_block, vmem_limit


def _choose_tile_s(C, S, itemsize, target_block, vmem_limit):
    """Lane tile: always a 128-multiple, VMEM-capped, with a lane floor."""
    row_bytes = max(1, C * itemsize)
    lanes = (target_block // row_bytes) // 128 * 128
    # Lane floor: keep per-channel contiguous DMA runs >= ~4 KiB for large C,
    # letting the block exceed the target (but never the VMEM cap below).
    lanes = max(lanes, 1024)
    # Cap so 2x in + 2x out (native dtype) + ~3 f32 temps fit under the limit.
    per_lane_bytes = C * (4 * itemsize + 3 * 4)
    max_lanes = max(128, (int(vmem_limit * 0.8) // per_lane_bytes) // 128 * 128)
    lanes = min(lanes, max_lanes)
    s_padded = ((S + 127) // 128) * 128          # 128-multiple; partial block OK
    return max(128, min(lanes, s_padded))


def _choose_b_tile(B, C, S, tile_s, itemsize, target_block):
    """Block over batch when one batch's spatial extent fits in a single tile."""
    if B <= 1 or tile_s < S:
        return 1
    block_bytes = max(1, C * tile_s * itemsize)
    b_tile = max(1, min(B, target_block // block_bytes))
    # Keep >= 2 grid steps so both v7x TensorCores get work when n_s == 1.
    if b_tile >= B and B >= 2:
        b_tile = (B + 1) // 2
    return b_tile


def _prenorm_kernel(x_ref, gamma_ref, o_ref):
    # x_ref: (b_tile, C, TILE_S) block -- full channel axis, lane-dense spatial.
    x = x_ref[...].astype(jnp.float32)
    mean = jnp.mean(x, axis=1, keepdims=True)          # (b_tile, 1, TILE_S)
    xc = x - mean
    var = jnp.mean(xc * xc, axis=1, keepdims=True)     # unbiased=False
    inv = jax.lax.rsqrt(var + EPS)
    y = xc * inv * gamma_ref[...]                      # gamma: (1, C, 1) f32
    o_ref[...] = y.astype(o_ref.dtype)


def layer_norm_channel(x, gamma):
    """x: (B, C, T, H, W), gamma: (C,).  Returns same shape/dtype as x."""
    B, C, T, H, W = x.shape
    S = T * H * W
    itemsize = jnp.dtype(x.dtype).itemsize

    # Zero-copy reshapes only; no transposes.
    x_k = x.reshape(B, C, S)
    gamma_k = gamma.reshape(1, C, 1).astype(jnp.float32)

    target_block, vmem_limit = _budgets()
    tile_s = _choose_tile_s(C, S, itemsize, target_block, vmem_limit)
    b_tile = _choose_b_tile(B, C, S, tile_s, itemsize, target_block)
    grid = (pl.cdiv(B, b_tile), pl.cdiv(S, tile_s))

    out = pl.pallas_call(
        _prenorm_kernel,
        out_shape=jax.ShapeDtypeStruct((B, C, S), x.dtype),
        grid_spec=pltpu.PrefetchScalarGridSpec(
            num_scalar_prefetch=0,
            grid=grid,
            in_specs=[
                pl.BlockSpec((b_tile, C, tile_s), lambda b, s: (b, 0, s)),
                pl.BlockSpec((1, C, 1), lambda b, s: (0, 0, 0)),
            ],
            out_specs=pl.BlockSpec((b_tile, C, tile_s), lambda b, s: (b, 0, s)),
        ),
        compiler_params=pltpu.CompilerParams(
            dimension_semantics=("parallel", "parallel"),
            vmem_limit_bytes=int(vmem_limit),
        ),
    )(x_k, gamma_k)

    return out.reshape(B, C, T, H, W)


def prenorm(x, gamma, fn=lambda y: y, **kwargs):
    """PreNorm.forward: fn(LayerNorm(x), **kwargs)."""
    return fn(layer_norm_channel(x, gamma), **kwargs)


def _reference(x, gamma):
    # Pure-JAX reference mirroring the PyTorch LayerNorm exactly.
    xf = x.astype(jnp.float32)
    mean = jnp.mean(xf, axis=1, keepdims=True)
    var = jnp.mean((xf - mean) ** 2, axis=1, keepdims=True)  # unbiased=False
    g = gamma.reshape(1, -1, 1, 1, 1).astype(jnp.float32)
    return ((xf - mean) / jnp.sqrt(var + EPS) * g).astype(x.dtype)


if __name__ == "__main__":
    key = jax.random.PRNGKey(0)

    # Deterministic parameter init: LayerNorm.gamma = ones(1, dim, 1, 1, 1).
    C = 8
    gamma = jnp.ones((C,), dtype=jnp.float32)

    # 1) 128-aligned spatial extent (S = 512).
    B, T, H, W = 2, 4, 8, 16
    k1, k2 = jax.random.split(key)
    x = jax.random.normal(k1, (B, C, T, H, W), dtype=jnp.float32)
    out = jax.block_until_ready(prenorm(x, gamma))      # fn = identity
    ref = _reference(x, gamma)
    assert out.shape == x.shape and out.dtype == x.dtype
    assert jnp.allclose(out, ref, atol=1e-5, rtol=1e-5), "mismatch (aligned S)"

    # 2) Non-128-aligned spatial extent (S = 180): exercises the masked
    #    partial last lane block that replaced the full-S fallback.
    B2, T2, H2, W2 = 2, 3, 6, 10
    x2 = jax.random.normal(k2, (B2, C, T2, H2, W2), dtype=jnp.float32)
    out2 = jax.block_until_ready(prenorm(x2, gamma))
    ref2 = _reference(x2, gamma)
    assert out2.shape == x2.shape and out2.dtype == x2.dtype
    assert jnp.allclose(out2, ref2, atol=1e-5, rtol=1e-5), "mismatch (ragged S)"

    print("KERNEL_OK")
</pallas_src>

<mosaic_0001>
module attributes {stable_mosaic.version = 11 : i64} {
  func.func @_prenorm_kernel(%arg0: i32, %arg1: i32, %arg2: memref<1x8x512xf32, #tpu.memory_space<vmem>>, %arg3: memref<1x8x1xf32, #tpu.memory_space<vmem>>, %arg4: memref<1x8x512xf32, #tpu.memory_space<vmem>>) attributes {dimension_semantics = [#tpu.dimension_semantics<parallel>, #tpu.dimension_semantics<parallel>], iteration_bounds = array<i64: 2, 1>, scalar_prefetch = 0 : i64, scratch_operands = 0 : i64, tpu.core_type = #tpu.core_type<tc>, window_params = [{transform_indices = @transform_0, window_bounds = array<i64: 1, 8, 512>}, {pipeline_mode = #tpu.pipeline_mode<synchronous>, transform_indices = @transform_1, window_bounds = array<i64: 1, 8, 1>}, {transform_indices = @transform_2, window_bounds = array<i64: 1, 8, 512>}]} {
    %c0 = arith.constant 0 : index
    %c0_0 = arith.constant 0 : index
    %c0_1 = arith.constant 0 : index
    %0 = vector.load %arg2[%c0, %c0_0, %c0_1] : memref<1x8x512xf32, #tpu.memory_space<vmem>>, vector<1x8x512xf32>
    %cst = arith.constant dense<0.000000e+00> : vector<1x512xf32>
    %1 = vector.multi_reduction <add>, %0, %cst [1] : vector<1x8x512xf32> to vector<1x512xf32>
    %2 = vector.shape_cast %1 : vector<1x512xf32> to vector<1x1x512xf32>
    %cst_2 = arith.constant 8.000000e+00 : f32
    %3 = vector.broadcast %cst_2 : f32 to vector<1x1x512xf32>
    %4 = arith.divf %2, %3 : vector<1x1x512xf32>
    %5 = vector.broadcast %4 : vector<1x1x512xf32> to vector<1x8x512xf32>
    %6 = arith.subf %0, %5 : vector<1x8x512xf32>
    %7 = arith.mulf %6, %6 : vector<1x8x512xf32>
    %cst_3 = arith.constant dense<0.000000e+00> : vector<1x512xf32>
    %8 = vector.multi_reduction <add>, %7, %cst_3 [1] : vector<1x8x512xf32> to vector<1x512xf32>
    %9 = vector.shape_cast %8 : vector<1x512xf32> to vector<1x1x512xf32>
    %cst_4 = arith.constant 8.000000e+00 : f32
    %10 = vector.broadcast %cst_4 : f32 to vector<1x1x512xf32>
    %11 = arith.divf %9, %10 : vector<1x1x512xf32>
    %cst_5 = arith.constant 9.99999974E-6 : f32
    %12 = vector.broadcast %cst_5 : f32 to vector<1x1x512xf32>
    %13 = arith.addf %11, %12 : vector<1x1x512xf32>
    %14 = math.rsqrt %13 : vector<1x1x512xf32>
    %15 = vector.broadcast %14 : vector<1x1x512xf32> to vector<1x8x512xf32>
    %16 = arith.mulf %6, %15 : vector<1x8x512xf32>
    %c0_6 = arith.constant 0 : index
    %c0_7 = arith.constant 0 : index
    %c0_8 = arith.constant 0 : index
    %17 = vector.load %arg3[%c0_6, %c0_7, %c0_8] : memref<1x8x1xf32, #tpu.memory_space<vmem>>, vector<1x8x1xf32>
    %18 = vector.broadcast %17 : vector<1x8x1xf32> to vector<1x8x512xf32>
    %19 = arith.mulf %16, %18 : vector<1x8x512xf32>
    %c0_9 = arith.constant 0 : index
    %c0_10 = arith.constant 0 : index
    %c0_11 = arith.constant 0 : index
    %20 = vector.load %arg4[%c0_9, %c0_10, %c0_11] : memref<1x8x512xf32, #tpu.memory_space<vmem>>, vector<1x8x512xf32>
    tpu.vector_store %arg4[%c0_9, %c0_10, %c0_11], %19 {strides = array<i32>} : memref<1x8x512xf32, #tpu.memory_space<vmem>>, vector<1x8x512xf32>,
    return
  }
  func.func @transform_0(%arg0: i32, %arg1: i32) -> (i32, i32, i32) {
    %c0_i32 = arith.constant 0 : i32
    %c0_i32_0 = arith.constant 0 : i32
    return %arg0, %c0_i32, %arg1 : i32, i32, i32
  }
  func.func @transform_1(%arg0: i32, %arg1: i32) -> (i32, i32, i32) {
    %c0_i32 = arith.constant 0 : i32
    %c0_i32_0 = arith.constant 0 : i32
    %c0_i32_1 = arith.constant 0 : i32
    %c0_i32_2 = arith.constant 0 : i32
    return %c0_i32, %c0_i32_0, %c0_i32_1 : i32, i32, i32
  }
  func.func @transform_2(%arg0: i32, %arg1: i32) -> (i32, i32, i32) {
    %c0_i32 = arith.constant 0 : i32
    %c0_i32_0 = arith.constant 0 : i32
    return %arg0, %c0_i32, %arg1 : i32, i32, i32
  }
}

</mosaic_0001>

<bundles_post_ra>
// kernel: tpu_custom_call.1
= control target key start
LH: loop header
LB: loop body
LE: loop exit
PB: predicated region body
PF: predicated region fallthrough
CT: control target
= control target key end

     0   :  { %7 = vsyncpa [#allocation3], 0  ;;  %s792_s0 = inlined_call_operand.hbm [shape: f32[2,8,512], index: 0, kind: input, shape index: {}]   ;;  %s793_s1 = inlined_call_operand.vmem [shape: f32[1,8,1], index: 1, kind: input, shape index: {}]   ;;  %s794_s2 = inlined_call_operand.hbm [shape: f32[2,8,512], index: 2, kind: output, shape index: {}]  }
   0x1   :  { %9 = vsyncpa [#allocation3 + $0x1], 0 }
   0x2   :  { %10 = vsyncpa [#allocation4], 0 }
   0x3   :  { %12 = vsyncpa [#allocation4 + $0x1], 0  ;;  %s645_s9 = smov 0   ;;  %s647_s10 = smov 0  }
   0x4   :  { %s649_s11 = smov 0   ;;  %s651_s12 = smov 0  }
   0x5   :  { %s653_s13 = smov 0   ;;  %s655_s14 = smov 0  }
   0x6 LB: > { %s422_s15 = sadd.s32 4294967295, %s626_s14   ;;  %s423_s16 = sadd.s32 4294967294, %s626_s14   ;;  %s626_s14 = sphi %s655_s14, %s18_s14   ;;  %s622_s13 = sphi %s653_s13, %s803_s13   ;;  %s618_s12 = sphi %s651_s12, %s802_s12   ;;  %s614_s11 = sphi %s649_s11, %s801_s11   ;;  %s610_s10 = sphi %s647_s10, %s800_s10   ;;  %s606_s9 = sphi %s645_s9, %s799_s9  }
   0x7   : > { %s30_s17 = sadd.s32 1, %s622_s13  ;;  %s39_s18 = sadd.s32 1, %s614_s11 }
   0x8   : > { %p32_p0 = scmp.ge.s32.totalorder %s30_s17, 2  ;;  %p46_p1 = scmp.ne.s32.totalorder %s614_s11, %s610_s10 }
   0x9   : > { %p47_p2 = scmp.eq.s32.totalorder %s626_s14, 0  ;;  %p52_p3 = scmp.ne.s32.totalorder %s610_s10, %s606_s9 }
   0xa   : > { %s805_s17 = smov (%p32_p0, %s30_s17), 0  ;;  %p53_p5 = scmp.eq.s32.totalorder %s422_s15, 0 }
   0xb   : > { %p686_p4 = por %p47_p2, %p46_p1  ;;  %s34_s20 = ssub.s32 %s622_s13, %s805_s17 }
   0xc   : > { %p99_p6 = scmp.eq.s32.totalorder %s422_s15, 1  ;;  %p37_p7 = scmp.eq.s32.totalorder %s34_s20, 0 }
   0xd   : > { %p692_p8 = por %p53_p5, %p52_p3  ;;  %p105_p10 = scmp.eq.s32.totalorder %s423_s16, 1 }
   0xe   : > { %p696_p9 = por %p99_p6, %p46_p1  ;;  %p425_p12 = scmp.ge.s32.totalorder %s626_s14, 2 }
   0xf   : > { %s701_s23 = scalar_select %p37_p7, %s614_s11, %s39_s18  }
  0x10   : > { %p703_p11 = por %p105_p10, %p52_p3  ;;  %p451_p13 = scmp.lt.s32.totalorder %s626_s14, 2 }
  0x11   : > { %s128_s25 = sand.u32 1, %s614_s11   ;;  %s437_s27 = sshll.u32 %s622_s13, 5 }
  0x12   : > { %s426_s26 = sshll.u32 %s128_s25, 5  ;;  %s139_s30 = scalar_lea.hbm %s792_s0, %s437_s27 }
  0x13   : > { %s132_s3 = scalar_lea.vmem [#allocation2], %s426_s26  ;;  %s141_s5 = sshll.u32 %s139_s30, 4  ;;  %s142_s5 = int_to_ptr.hbm [resolvable:$true] %s141_s5 }
  0x14   : > { %s143_s4 = sshll.u32 %s132_s3, 4  ;;  %p444_p0 = pnand %p451_p13, %p686_p4  ;;  %s144_s4 = int_to_ptr.vmem [resolvable:$true] %s143_s4 }
  0x15   : > { %p429_p1 = scmp.ge.s32.totalorder %s626_s14, 1  ;;  %p148_p2 = scmp.lt.s32.totalorder %s626_s14, 3 }
  0x16   : > { %s129_s6 = scalar_lea.sflag [#allocation3], %s128_s25 }
  0x17   : > { %446 = dma.hbm_to_vmem [thread:$0]  (!%p444_p0), %s142_s5, 512, %s144_s4, %s129_s6  }
  0x18   : > { %p149_p3 = pnand %p429_p1, %p148_p2 }
  0x19   : > { %s719_s7 = sand.u32 (!%p149_p3), 1, %s610_s10  }
  0x1a   : > { %152 = sbr.rel (%p149_p3) target bundleno = 157 (0x9d), region = 28  ;;  %s430_s8 = sshll.u32 (!%p149_p3), %s719_s7, 5 }
  0x1b   : > { %s155_s15 = scalar_lea.sflag (!%p149_p3), [#allocation3], %s719_s7  ;;  %s158_s16 = scalar_lea.vmem (!%p149_p3), [#allocation2], %s430_s8 }
  0x1f   : > { %597 = dma.done.wait (%p692_p8), %s155_s15, 512  }
  0x20   : > { %599 = vsyncadd (%p692_p8), %s155_s15, 4294966784  ;;  %v628_v0 = vmov 0   ;;  %v305_v1 = vld [vmem:[%s793_s1] sm:$0xff]  ;;  %v629_v2 = vmov 8.0   ;;  %v183_v7 = vld [vmem:[%s158_s16 + $0x8] sm:$0xff]  ;;  %s438_s20 = sshll.u32 %s618_s12, 5 }
  0x21   : > { %503 = vset.pattern.permute.xlu0 %v628_v0  ;;  %504 = vrcp.f32 %v629_v2  ;;  %v182_v6 = vld [vmem:[%s158_s16] sm:$0xff]  ;;  %v184_v8 = vld [vmem:[%s158_s16 + $0x10] sm:$0xff]  ;;  %v185_v9 = vld [vmem:[%s158_s16 + $0x18] sm:$0xff]  ;;  %v192_v11 = vrot.slane %v183_v7, 4  ;;  %s333_s26 = scalar_lea.hbm %s794_s2, %s438_s20  ;;  %s179_s12 = scalar_lea.vmem [#allocation5], %s430_s8 }
  0x22   : > { %308 = vperm.xlu0 %503, %v305_v1   ;;  %v186_v10 = vrot.slane %v182_v6, 4  ;;  %v198_v12 = vrot.slane %v184_v8, 4  ;;  %v204_v14 = vrot.slane %v185_v9, 4  ;;  %s335_s27 = sshll.u32 %s179_s12, 4  ;;  %s337_s28 = sshll.u32 %s333_s26, 4  ;;  %s336_s27 = int_to_ptr.vmem [resolvable:$true] %s335_s27  ;;  %s338_s28 = int_to_ptr.hbm [resolvable:$true] %s337_s28 }
  0x23   : > { %v193_v16 = vadd.f32 %v192_v11, %v183_v7  ;;  %s320_s29 = scalar_lea.sflag [#allocation4], %s719_s7  ;;  %s558_s30 = sshra.s32 %s338_s28, 4  ;;  %s559_s30 = int_to_ptr.hbm [resolvable:$true] %s558_s30 }
  0x24   : > { %v187_v15 = vadd.f32 %v186_v10, %v182_v6  ;;  %v199_v17 = vadd.f32 %v198_v12, %v184_v8  ;;  %v205_v18 = vadd.f32 %v204_v14, %v185_v9  ;;  %s560_s3 = scalar_lea.hbm %s559_s30, 32  ;;  %s564_s6 = scalar_lea.hbm %s794_s2, 64 }
  0x25   : > { %v194_v20 = vrot.slane %v193_v16, 2  ;;  %p561_p4 = scmp.ne.s32.totalorder %s559_s30, %s560_s3  ;;  %p565_p7 = scmp.lt.s32.totalorder %s559_s30, %s794_s2 }
  0x26   : > { %v188_v19 = vrot.slane %v187_v15, 2  ;;  %v200_v21 = vrot.slane %v199_v17, 2  ;;  %v206_v23 = vrot.slane %v205_v18, 2  ;;  %p566_p8 = scmp.lt.s32.totalorder %s564_s6, %s560_s3 }
  0x27   : > { %v505_v3 = vpop.eup %504  ;;  %v195_v25 = vadd.f32 %v194_v20, %v193_v16  ;;  %p562_p5 = pnand %p561_p4, %p696_p9 }
  0x28   : > { %v211_v4 = vmul.f32 8.0, %v505_v3  ;;  %vm215_vm0 = vweird.f32 %v505_v3  ;;  %v189_v24 = vadd.f32 %v188_v19, %v187_v15  ;;  %v201_v26 = vadd.f32 %v200_v21, %v199_v17  ;;  %p567_p10 = por %p566_p8, %p565_p7 }
  0x29   : > { %v207_v27 = vadd.f32 %v206_v23, %v205_v18  ;;  %v196_v29 = vrot.slane %v195_v25, 1  ;;  %p563_p6 = pneg %p562_p5 }
  0x2a   : > { %v212_v5 = vsub.f32 1.0, %v211_v4  ;;  %v190_v28 = vrot.slane %v189_v24, 1  ;;  %v202_v30 = vrot.slane %v201_v26, 1 }
  0x2b   : > { %v208_v32 = vrot.slane %v207_v27, 1  ;;  %v197_v34 = vadd.f32 %v196_v29, %v195_v25  ;;  %p568_p13 = pnand %p567_p10, %p563_p6 }
  0x2c   : > { %v213_v13 = vmul.f32 %v505_v3, %v212_v5  ;;  %v191_v33 = vadd.f32 %v190_v28, %v189_v24  ;;  %v203_v35 = vadd.f32 %v202_v30, %v201_v26 }
  0x2d   : > { %v209_v36 = vadd.f32 %v208_v32, %v207_v27 }
  0x2e   : > { %v214_v22 = vadd.f32 %v505_v3, %v213_v13 }
  0x30   : > { %v216_v31 = vsel %vm215_vm0, %v505_v3, %v214_v22 }
  0x31   : > { %v217_v37 = vmul.f32 %v216_v31, %v191_v33  ;;  %v218_v38 = vmul.f32 %v216_v31, %v197_v34  ;;  %v219_v39 = vmul.f32 %v216_v31, %v203_v35  ;;  %v220_v40 = vmul.f32 %v216_v31, %v209_v36 }
  0x33   : > { %v732_v41 = vsub.f32 %v182_v6, %v217_v37  ;;  %v734_v42 = vsub.f32 %v183_v7, %v218_v38  ;;  %v736_v43 = vsub.f32 %v184_v8, %v219_v39  ;;  %v738_v44 = vsub.f32 %v185_v9, %v220_v40 }
  0x35   : > { %v225_v45 = vmul.f32 %v732_v41, %v732_v41  ;;  %v226_v46 = vmul.f32 %v734_v42, %v734_v42  ;;  %v227_v47 = vmul.f32 %v736_v43, %v736_v43  ;;  %v228_v48 = vmul.f32 %v738_v44, %v738_v44 }
  0x37   : > { %v229_v49 = vrot.slane %v225_v45, 4  ;;  %v235_v50 = vrot.slane %v226_v46, 4  ;;  %v241_v51 = vrot.slane %v227_v47, 4  ;;  %v247_v52 = vrot.slane %v228_v48, 4 }
  0x39   : > { %v230_v53 = vadd.f32 %v229_v49, %v225_v45  ;;  %v236_v54 = vadd.f32 %v235_v50, %v226_v46  ;;  %v242_v55 = vadd.f32 %v241_v51, %v227_v47  ;;  %v248_v56 = vadd.f32 %v247_v52, %v228_v48 }
  0x3b   : > { %v231_v57 = vrot.slane %v230_v53, 2  ;;  %v237_v58 = vrot.slane %v236_v54, 2  ;;  %v243_v59 = vrot.slane %v242_v55, 2  ;;  %v249_v60 = vrot.slane %v248_v56, 2 }
  0x3d   : > { %v232_v61 = vadd.f32 %v231_v57, %v230_v53  ;;  %v238_v62 = vadd.f32 %v237_v58, %v236_v54  ;;  %v244_v63 = vadd.f32 %v243_v59, %v242_v55  ;;  %v250_v0 = vadd.f32 %v249_v60, %v248_v56 }
  0x3f   : > { %v233_v1 = vrot.slane %v232_v61, 1  ;;  %v239_v2 = vrot.slane %v238_v62, 1  ;;  %v245_v3 = vrot.slane %v244_v63, 1  ;;  %v251_v4 = vrot.slane %v250_v0, 1 }
  0x41   : > { %v234_v5 = vadd.f32 %v233_v1, %v232_v61  ;;  %v240_v6 = vadd.f32 %v239_v2, %v238_v62  ;;  %v246_v7 = vadd.f32 %v245_v3, %v244_v63  ;;  %v252_v8 = vadd.f32 %v251_v4, %v250_v0 }
  0x43   : > { %v253_v9 = vmul.f32 %v234_v5, %v216_v31  ;;  %v254_v10 = vmul.f32 %v240_v6, %v216_v31  ;;  %v255_v11 = vmul.f32 %v246_v7, %v216_v31  ;;  %v256_v12 = vmul.f32 %v252_v8, %v216_v31 }
  0x45   : > { %v257_v13 = vadd.f32 1e-05, %v253_v9  ;;  %v258_v14 = vadd.f32 1e-05, %v254_v10  ;;  %v259_v15 = vadd.f32 1e-05, %v255_v11 }
  0x46   : > { %v260_v16 = vadd.f32 1e-05, %v256_v12 }
  0x47   : > { %506 = vrsqrt.f32 %v257_v13  ;;  %vm267_vm1 = vweird.f32 %v257_v13  ;;  %vm277_vm3 = vweird.f32 %v258_v14  ;;  %vm287_vm5 = vweird.f32 %v259_v15 }
  0x48   : > { %508 = vrsqrt.f32 %v258_v14  ;;  %vm297_vm8 = vweird.f32 %v260_v16 }
  0x49   : > { %510 = vrsqrt.f32 %v259_v15 }
  0x4a   : > { %512 = vrsqrt.f32 %v260_v16 }
  0x4d   : > { %v507_v17 = vpop.eup %506 }
  0x4e   : > { %v509_v18 = vpop.eup %508  ;;  %v262_v21 = vmul.f32 %v507_v17, %v257_v13  ;;  %vm268_vm2 = vweird.f32 %v507_v17 }
  0x4f   : > { %v511_v19 = vpop.eup %510  ;;  %v272_v22 = vmul.f32 %v509_v18, %v258_v14  ;;  %vm278_vm4 = vweird.f32 %v509_v18  ;;  %vm269_vm7 = vmor %vm267_vm1, %vm268_vm2 }
  0x50   : > { %v513_v20 = vpop.eup %512  ;;  %v282_v23 = vmul.f32 %v511_v19, %v259_v15  ;;  %v263_v25 = vmul.f32 %v507_v17, %v262_v21  ;;  %vm288_vm6 = vweird.f32 %v511_v19  ;;  %vm279_vm10 = vmor %vm277_vm3, %vm278_vm4 }
  0x51   : > { %v292_v24 = vmul.f32 %v513_v20, %v260_v16  ;;  %v273_v26 = vmul.f32 %v509_v18, %v272_v22  ;;  %vm298_vm9 = vweird.f32 %v513_v20  ;;  %vm289_vm11 = vmor %vm287_vm5, %vm288_vm6 }
  0x52   : > { %v283_v27 = vmul.f32 %v511_v19, %v282_v23  ;;  %v264_v29 = vmul.f32 0.5, %v263_v25  ;;  %vm299_vm12 = vmor %vm297_vm8, %vm298_vm9 }
  0x53   : > { %v293_v28 = vmul.f32 %v513_v20, %v292_v24  ;;  %v274_v30 = vmul.f32 0.5, %v273_v26 }
  0x54   : > { %v284_v31 = vmul.f32 0.5, %v283_v27  ;;  %v265_v33 = vsub.f32 1.5, %v264_v29 }
  0x55   : > { %v294_v32 = vmul.f32 0.5, %v293_v28  ;;  %v275_v34 = vsub.f32 1.5, %v274_v30 }
  0x56   : > { %v285_v35 = vsub.f32 1.5, %v284_v31  ;;  %v266_v37 = vmul.f32 %v507_v17, %v265_v33 }
  0x57   : > { %v295_v36 = vsub.f32 1.5, %v294_v32  ;;  %v276_v38 = vmul.f32 %v509_v18, %v275_v34 }
  0x58   : > { %v286_v39 = vmul.f32 %v511_v19, %v285_v35  ;;  %v270_v45 = vsel %vm269_vm7, %v507_v17, %v266_v37 }
  0x59   : > { %v296_v40 = vmul.f32 %v513_v20, %v295_v36  ;;  %v280_v46 = vsel %vm279_vm10, %v509_v18, %v276_v38  ;;  %v301_v49 = vmul.f32 %v270_v45, %v732_v41 }
  0x5a   : > { %v290_v47 = vsel %vm289_vm11, %v511_v19, %v286_v39  ;;  %v302_v50 = vmul.f32 %v280_v46, %v734_v42 }
  0x5b   : > { %v300_v48 = vsel %vm299_vm12, %v513_v20, %v296_v40  ;;  %v303_v51 = vmul.f32 %v290_v47, %v736_v43 }
  0x5c   : > { %v304_v52 = vmul.f32 %v300_v48, %v738_v44 }
  0x94   : > { %v309_v53 = vpop.permute.xlu0 %308 }
  0x95   : > { %v311_v54 = vmul.f32 %v309_v53, %v301_v49  ;;  %v312_v55 = vmul.f32 %v309_v53, %v302_v50  ;;  %v313_v56 = vmul.f32 %v309_v53, %v303_v51  ;;  %v314_v41 = vmul.f32 %v309_v53, %v304_v52 }
  0x97   : > { %315 = vst [vmem:[%s179_s12] sm:$0xff] %v311_v54 }
  0x98   : > { %316 = vst [vmem:[%s179_s12 + $0x8] sm:$0xff] %v312_v55 }
  0x99   : > { %317 = vst [vmem:[%s179_s12 + $0x10] sm:$0xff] %v313_v56 }
  0x9a   : > { %318 = vst [vmem:[%s179_s12 + $0x18] sm:$0xff] %v314_v41 }
  0x9b   : > { %571 = shalt.err (!%p568_p13)
}
  0x9c   : > { %441 = dma.vmem_to_hbm [thread:$0]  (%p696_p9), %s336_s27, 512, %s338_s28, %s320_s29  }
  0x9d PF: > { %s349_s7 = sand.u32 1, %s606_s9   ;;  %p448_p0 = pnand %p425_p12, %p703_p11 }
  0x9e   : > { %s350_s16 = scalar_lea.sflag [#allocation4], %s349_s7 }
  0x9f   : > { %p449_p1 = pneg %p448_p0 }
  0xa1   : > { %601 = dma.done.wait (%p449_p1), %s350_s16, 512  }
  0xa2   : > { %603 = vsyncadd (%p449_p1), %s350_s16, 4294966784  ;;  %s18_s14 = sadd.s32 1, %s626_s14   ;;  %s799_s9 = smov %s610_s10 }
  0xa3   : > { %p15_p2 = scmp.ge.s32.totalorder %s18_s14, 4   ;;  %s800_s10 = smov %s614_s11 }
  0xa4   : > { %s801_s11 = smov %s701_s23  ;;  %s802_s12 = smov %s622_s13 }
  0xa5   : > { %s803_s13 = smov %s805_s17  ;;  %17 = sbr.rel (!%p15_p2) target bundleno = 6 (0x6), region = 73 }
  0xaa   :  { %356 = vsyncpa [#allocation3], 1 }
  0xab   :  { %358 = vsyncpa [#allocation3 + $0x1], 1 }
  0xac   :  { %359 = vsyncpa [#allocation4], 1 }
  0xad   :  { %361 = vsyncpa [#allocation4 + $0x1], 1 }

</bundles_post_ra>
